<compile_context>
chip_gen: v5e
topology: v5e:2x2
jax: 0.10.0
libtpu: 0.0.40
codegen_flags: <defaults>
</compile_context>

<pallas_src>
import functools
import math

import jax
import jax.numpy as jnp
from jax import lax
from jax.experimental import pallas as pl
from jax.experimental.pallas import tpu as pltpu


_EPS = 1e-12  # F.normalize default eps


def _round_up(x, m):
    return ((x + m - 1) // m) * m


def _vmem_soft_limit():
    """~72% of this generation's per-core VMEM (v5e/v6e 128 MiB, v7x 64 MiB)."""
    cap = 64 << 20  # conservative fallback if the query is unavailable
    try:
        cap = int(pltpu.get_tpu_info().vmem_capacity_bytes)
    except Exception:
        pass
    return int(0.72 * cap)


def _pick_row_block(hw, acc_budget_bytes):
    """Largest 128-multiple divisor of HW whose (rows, HW) f32 acc fits budget."""
    if hw * hw * 4 <= acc_budget_bytes:
        return hw
    max_rows = max(acc_budget_bytes // (hw * 4), 128)
    best = None
    for cand in range(128, hw, 128):
        if hw % cand == 0 and cand <= max_rows:
            best = cand
    # TODO(synk): pad HW to a multiple of 128 so non-divisible spatial extents
    # can also be row-split; fall back to one full-size accumulator for now.
    return best if best is not None else hw


def _avg_pool_to(x, out_h, out_w):
    """F.adaptive_avg_pool2d for the divisible case (plain average pooling)."""
    n, c, h, w = x.shape
    if h % out_h == 0 and w % out_w == 0:
        kh, kw = h // out_h, w // out_w
        return x.reshape(n, c, out_h, kh, out_w, kw).mean(axis=(3, 5)).astype(x.dtype)
    # TODO(synk): general non-divisible adaptive_avg_pool2d binning not implemented.
    raise NotImplementedError("adaptive_avg_pool2d with non-divisible sizes")


def _nst_kernel(x_ref, *rest, n_steps, row_split, c_s, inv_cs, inv_ct, mxu_bf16):
    """Grid = (N, row_blocks, n_steps).

    x_ref:  (tc, HW) channel tile of the stacked [student; teacher] tensor.
    xa_ref: (tc, hw_block) column slice of the same tile (only when row_split).
    o_ref:  (1, 1) per-(batch, row-block) partial Frobenius-norm^2.
    d_acc:  (hw_block, HW) f32 accumulator scratch (only when n_steps > 1).
    """
    if row_split:
        xa_ref, o_ref = rest[0], rest[1]
        acc = rest[2:]
    else:
        o_ref = rest[0]
        acc = rest[1:]
        xa_ref = None

    ci = pl.program_id(2)
    tc = x_ref.shape[0]

    x = x_ref[...].astype(jnp.float32)                               # (tc, HW)

    # Row-wise L2 normalization over HW (== F.normalize(dim=2) with eps clamp),
    # via rsqrt (EUP slot) instead of sqrt + divide.
    inv_norm = lax.rsqrt(jnp.maximum(jnp.sum(x * x, axis=-1, keepdims=True),
                                     jnp.float32(_EPS * _EPS)))      # (tc, 1)

    # Per-row scale: student rows get +1/sqrt(C_s), teacher rows +/-1/sqrt(C_t)
    # (teacher sign folded into the B operand so ONE dot yields
    #  S^T S / C_s - T^T T / C_t).  Zero pad rows contribute exactly 0.
    row = ci * tc + lax.broadcasted_iota(jnp.int32, (tc, 1), 0)
    is_s = row < c_s
    sa = jnp.where(is_s, jnp.float32(inv_cs ** 0.5), jnp.float32(inv_ct ** 0.5))
    sb = jnp.where(is_s, jnp.float32(inv_cs ** 0.5), -jnp.float32(inv_ct ** 0.5))

    b = x * (inv_norm * sb)                                          # (tc, HW)
    if xa_ref is None:
        a = x * (inv_norm * sa)                                      # (tc, HW)
    else:
        a = xa_ref[...].astype(jnp.float32) * (inv_norm * sa)        # (tc, hw_blk)

    if mxu_bf16:
        # Feed the MXU bf16 operands (native rate); accumulation stays f32.
        a = a.astype(jnp.bfloat16)
        b = b.astype(jnp.bfloat16)

    dims = (((0,), (0,)), ((), ()))                  # contract over channel tile
    g = lax.dot_general(a, b, dims, preferred_element_type=jnp.float32)

    if n_steps == 1:
        # Whole channel dim fits one tile: no scratch zero-init / read-modify-write.
        o_ref[...] = jnp.sum(g * g, keepdims=True)
    else:
        d_acc, = acc

        @pl.when(ci == 0)
        def _():
            d_acc[...] = jnp.zeros_like(d_acc)

        d_acc[...] += g

        @pl.when(ci == n_steps - 1)
        def _():
            d = d_acc[...]
            o_ref[...] = jnp.sum(d * d, keepdims=True)   # ||D rows||_F^2 -> (1, 1)


def nst_loss_pair(f_s, f_t, *, mxu_bf16=True, channel_tile=None,
                  gram_row_block=None):
    """NSTLoss.nst_loss(f_s, f_t) forward value for one feature-map pair."""
    n, c_s, h_s, w_s = f_s.shape
    n_t, c_t, h_t, w_t = f_t.shape
    assert n == n_t, "student/teacher batch sizes must match"

    # Match spatial sizes exactly like the PyTorch module.
    if h_s > h_t:
        f_s = _avg_pool_to(f_s, h_t, h_t)
    elif h_s < h_t:
        f_t = _avg_pool_to(f_t, h_s, h_s)
    hw = f_s.shape[2] * f_s.shape[3]
    assert hw == f_t.shape[2] * f_t.shape[3]

    # Keep the HBM dtype (bf16 stays bf16 -> half the HBM traffic).
    dtype = jnp.result_type(f_s.dtype, f_t.dtype)
    itemsize = jnp.dtype(dtype).itemsize
    align = {1: 32, 2: 16, 4: 8}.get(itemsize, 8)   # sublane packing per dtype

    vmem_soft = _vmem_soft_limit()

    # --- Gram row split: keep the (rows, HW) f32 accumulator within budget and
    # give the second TensorCore (v7x) work on huge-HW layers. ---
    if gram_row_block is not None:
        assert gram_row_block == hw or (hw % gram_row_block == 0
                                        and gram_row_block % 128 == 0)
        hw_block = gram_row_block
    else:
        hw_block = _pick_row_block(hw, max(vmem_soft // 3, 4 << 20))
    n_row_blocks = hw // hw_block
    row_split = n_row_blocks > 1

    # --- Channel tiling: stack S and T along the channel axis and zero-pad the
    # total so the MXU contraction dim per step is a large aligned tile,
    # independent of gcd(C_s, C_t). ---
    c_tot = c_s + c_t
    acc_bytes = hw_block * hw * 4
    input_budget = max(vmem_soft - acc_bytes - (4 << 20), 2 << 20)
    per_row_bytes = (hw + (hw_block if row_split else 0)) * itemsize
    if channel_tile is None:
        tc_cap = (input_budget // (2 * per_row_bytes)) // align * align
        tc_max = max(align, min(512, tc_cap, _round_up(c_tot, align)))
    else:
        tc_max = max(align, _round_up(channel_tile, align))
    n_steps = -(-c_tot // tc_max)                      # cdiv
    tc = _round_up(-(-c_tot // n_steps), align)
    c_pad = n_steps * tc

    x = jnp.concatenate(
        [f_s.reshape(n, c_s, hw).astype(dtype),
         f_t.reshape(n, c_t, hw).astype(dtype)], axis=1)
    if c_pad > c_tot:
        x = jnp.pad(x, ((0, 0), (0, c_pad - c_tot), (0, 0)))

    kernel = functools.partial(
        _nst_kernel, n_steps=n_steps, row_split=row_split, c_s=c_s,
        inv_cs=1.0 / c_s, inv_ct=1.0 / c_t, mxu_bf16=mxu_bf16)

    in_specs = [pl.BlockSpec((None, tc, hw), lambda nb, rb, cb: (nb, cb, 0))]
    operands = [x]
    if row_split:
        # Second, column-sliced view of the same stacked array: the `a` operand
        # producing hw_block rows of the difference Gram per grid point.
        in_specs.append(
            pl.BlockSpec((None, tc, hw_block), lambda nb, rb, cb: (nb, cb, rb)))
        operands.append(x)

    scratch = ([] if n_steps == 1
               else [pltpu.VMEM((hw_block, hw), jnp.float32)])

    # VMEM limit: accumulator + double-buffered input tiles + headroom, capped
    # at ~72% of this generation's physical VMEM.
    mxu_itemsize = 2 if mxu_bf16 else 4
    est = ((0 if n_steps == 1 else acc_bytes)
           + 2 * 2 * tc * per_row_bytes
           + hw_block * hw * mxu_itemsize)
    vmem_limit = int(min(max(int(1.5 * est) + (8 << 20), 32 << 20), vmem_soft))

    flops = int(2 * n * n_row_blocks * c_pad * hw_block * hw      # Gram matmuls
                + 5 * n * n_row_blocks * c_pad * hw               # normalize/scale
                + 3 * n * hw * hw)                                # accumulate/reduce
    bytes_accessed = int(n * n_row_blocks * c_pad * hw * itemsize
                         + (n * n_row_blocks * c_pad * hw_block * itemsize
                            if row_split else 0)
                         + n * n_row_blocks * 4)
    transcendentals = int(n * n_row_blocks * c_pad)

    per_block = pl.pallas_call(
        kernel,
        out_shape=jax.ShapeDtypeStruct((n, n_row_blocks, 1, 1), jnp.float32),
        grid=(n, n_row_blocks, n_steps),
        in_specs=in_specs,
        out_specs=pl.BlockSpec((None, None, 1, 1),
                               lambda nb, rb, cb: (nb, rb, 0, 0)),
        scratch_shapes=scratch,
        compiler_params=pltpu.CompilerParams(
            dimension_semantics=("parallel", "parallel", "arbitrary"),
            vmem_limit_bytes=vmem_limit),
        cost_estimate=pl.CostEstimate(flops=flops,
                                      transcendentals=transcendentals,
                                      bytes_accessed=bytes_accessed),
    )(*operands)

    # loss = mean over batch of || S^T S / C_s - T^T T / C_t ||_F^2
    return jnp.sum(per_block) / n


def nst_loss(g_s, g_t):
    """NSTLoss.forward: sum of per-layer-pair losses (forward value only)."""
    total = jnp.float32(0.0)
    for f_s, f_t in zip(g_s, g_t):
        total = total + nst_loss_pair(f_s, f_t)
    return total


# ----------------------- pure-JAX reference (mirrors PyTorch) -----------------------

def _ref_normalize(x, eps=1e-12):
    x = x.astype(jnp.float32)
    nrm = jnp.sqrt(jnp.sum(x * x, axis=2, keepdims=True))
    return x / jnp.maximum(nrm, eps)


def _ref_poly_mean(a, b):
    g = jnp.einsum("nik,njk->nij", b.astype(jnp.float32), a.astype(jnp.float32))
    return jnp.mean(g * g)


def _ref_nst_pair(f_s, f_t):
    s_h, t_h = f_s.shape[2], f_t.shape[2]
    if s_h > t_h:
        f_s = _avg_pool_to(f_s, t_h, t_h)
    elif s_h < t_h:
        f_t = _avg_pool_to(f_t, s_h, s_h)
    f_s = _ref_normalize(f_s.reshape(f_s.shape[0], f_s.shape[1], -1))
    f_t = _ref_normalize(f_t.reshape(f_t.shape[0], f_t.shape[1], -1))
    return (_ref_poly_mean(f_t, f_t) + _ref_poly_mean(f_s, f_s)
            - 2.0 * _ref_poly_mean(f_s, f_t))


if __name__ == "__main__":
    key = jax.random.PRNGKey(0)
    k1, k2, k3, k4, k5, k6 = jax.random.split(key, 6)

    # Pair 0: identical shapes (batch=2, channels=4, 16x16 spatial).
    fs0 = jax.random.normal(k1, (2, 4, 16, 16), dtype=jnp.float32)
    ft0 = jax.random.normal(k2, (2, 4, 16, 16), dtype=jnp.float32)
    # Pair 1: student larger spatially (16 -> pooled to 8) and wider in channels.
    fs1 = jax.random.normal(k3, (2, 8, 16, 16), dtype=jnp.float32)
    ft1 = jax.random.normal(k4, (2, 4, 8, 8), dtype=jnp.float32)

    g_s = [fs0, fs1]
    g_t = [ft0, ft1]

    ref = sum(_ref_nst_pair(fs, ft) for fs, ft in zip(g_s, g_t))

    # Default fast path: bf16 MXU operands, f32 accumulation.
    out = jax.block_until_ready(nst_loss(g_s, g_t))
    assert out.shape == ()
    assert jnp.allclose(out, ref, rtol=5e-2, atol=1e-3), (out, ref)

    # Exact-precision path (f32 MXU operands): tight numerical check.
    out_f32 = jax.block_until_ready(
        sum(nst_loss_pair(fs, ft, mxu_bf16=False) for fs, ft in zip(g_s, g_t)))
    assert jnp.allclose(out_f32, ref, rtol=1e-4, atol=1e-6), (out_f32, ref)

    # Exercise the Gram row-split path (second parallel grid axis).
    out_rb = jax.block_until_ready(
        nst_loss_pair(fs0, ft0, mxu_bf16=False, gram_row_block=128))
    ref0 = _ref_nst_pair(fs0, ft0)
    assert jnp.allclose(out_rb, ref0, rtol=1e-4, atol=1e-6), (out_rb, ref0)

    # Exercise the multi-step channel reduction (scratch accumulator) path.
    fs2 = jax.random.normal(k5, (2, 24, 8, 8), dtype=jnp.float32)
    ft2 = jax.random.normal(k6, (2, 16, 8, 8), dtype=jnp.float32)
    out_acc = jax.block_until_ready(
        nst_loss_pair(fs2, ft2, mxu_bf16=False, channel_tile=16))
    ref2 = _ref_nst_pair(fs2, ft2)
    assert jnp.allclose(out_acc, ref2, rtol=1e-4, atol=1e-6), (out_acc, ref2)

    print("KERNEL_OK")
</pallas_src>

<mosaic_0001>
module attributes {stable_mosaic.version = 11 : i64} {
  func.func @_nst_kernel(%arg0: i32, %arg1: i32, %arg2: i32, %arg3: memref<1x8x256xf32, #tpu.memory_space<vmem>>, %arg4: memref<1x1x1x1xf32, #tpu.memory_space<vmem>>) attributes {dimension_semantics = [#tpu.dimension_semantics<parallel>, #tpu.dimension_semantics<parallel>, #tpu.dimension_semantics<arbitrary>], iteration_bounds = array<i64: 2, 1, 1>, scalar_prefetch = 0 : i64, scratch_operands = 0 : i64, tpu.core_type = #tpu.core_type<tc>, window_params = [{transform_indices = @transform_0, window_bounds = array<i64: 1, 8, 256>}, {transform_indices = @transform_1, window_bounds = array<i64: 1, 1, 1, 1>}]} {
    %c0 = arith.constant 0 : index
    %c0_0 = arith.constant 0 : index
    %c0_1 = arith.constant 0 : index
    %0 = vector.load %arg3[%c0, %c0_0, %c0_1] : memref<1x8x256xf32, #tpu.memory_space<vmem>>, vector<1x8x256xf32>
    %1 = vector.shape_cast %0 : vector<1x8x256xf32> to vector<8x256xf32>
    %2 = arith.mulf %1, %1 : vector<8x256xf32>
    %cst = arith.constant dense<0.000000e+00> : vector<8xf32>
    %3 = vector.multi_reduction <add>, %2, %cst [1] : vector<8x256xf32> to vector<8xf32>
    %4 = vector.shape_cast %3 : vector<8xf32> to vector<8x1xf32>
    %cst_2 = arith.constant 1.000000e-24 : f32
    %5 = vector.broadcast %cst_2 : f32 to vector<8x1xf32>
    %6 = arith.maximumf %4, %5 : vector<8x1xf32>
    %7 = math.rsqrt %6 : vector<8x1xf32>
    %c8_i32 = arith.constant 8 : i32
    %8 = arith.muli %arg2, %c8_i32 : i32
    %9 = tpu.iota {dimensions = array<i32: 0>} : vector<8x1xi32>
    %10 = vector.broadcast %8 : i32 to vector<8x1xi32>
    %11 = arith.addi %10, %9 : vector<8x1xi32>
    %c4_i32 = arith.constant 4 : i32
    %12 = vector.broadcast %c4_i32 : i32 to vector<8x1xi32>
    %13 = arith.cmpi slt, %11, %12 : vector<8x1xi32>
    %cst_3 = arith.constant 5.000000e-01 : f32
    %cst_4 = arith.constant 5.000000e-01 : f32
    %14 = vector.broadcast %cst_3 : f32 to vector<8x1xf32>
    %15 = vector.broadcast %cst_4 : f32 to vector<8x1xf32>
    %16 = arith.select %13, %14, %15 : vector<8x1xi1>, vector<8x1xf32>
    %cst_5 = arith.constant 0.000000e+00 : f32
    %cst_6 = arith.constant 5.000000e-01 : f32
    %17 = arith.subf %cst_5, %cst_6 : f32
    %cst_7 = arith.constant 5.000000e-01 : f32
    %18 = vector.broadcast %cst_7 : f32 to vector<8x1xf32>
    %19 = vector.broadcast %17 : f32 to vector<8x1xf32>
    %20 = arith.select %13, %18, %19 : vector<8x1xi1>, vector<8x1xf32>
    %21 = arith.mulf %7, %20 : vector<8x1xf32>
    %22 = vector.broadcast %21 : vector<8x1xf32> to vector<8x256xf32>
    %23 = arith.mulf %1, %22 : vector<8x256xf32>
    %24 = arith.mulf %7, %16 : vector<8x1xf32>
    %25 = vector.broadcast %24 : vector<8x1xf32> to vector<8x256xf32>
    %26 = arith.mulf %1, %25 : vector<8x256xf32>
    %27 = arith.truncf %26 : vector<8x256xf32> to vector<8x256xbf16>
    %28 = arith.truncf %23 : vector<8x256xf32> to vector<8x256xbf16>
    %cst_8 = arith.constant dense<0.000000e+00> : vector<256x256xf32>
    %29 = tpu.matmul %27, %28, %cst_8 {dimension_numbers = #tpu.dot_dimension_numbers<[0], [0], [1], [1], [0, 1, 1, 1], [], []>} : vector<8x256xbf16>, vector<8x256xbf16>, vector<256x256xf32> -> vector<256x256xf32>
    %30 = arith.mulf %29, %29 : vector<256x256xf32>
    %31 = vector.shape_cast %30 : vector<256x256xf32> to vector<1x256x256xf32>
    %cst_9 = arith.constant dense<0.000000e+00> : vector<1xf32>
    %32 = vector.multi_reduction <add>, %31, %cst_9 [1, 2] : vector<1x256x256xf32> to vector<1xf32>
    %33 = vector.shape_cast %32 : vector<1xf32> to vector<1x1x1xf32>
    %34 = vector.extract %33[0, 0, 0] : f32 from vector<1x1x1xf32>
    %35 = vector.broadcast %34 : f32 to vector<1x1xf32>
    %c0_10 = arith.constant 0 : index
    %c0_11 = arith.constant 0 : index
    %c0_12 = arith.constant 0 : index
    %c0_13 = arith.constant 0 : index
    %36 = vector.load %arg4[%c0_10, %c0_11, %c0_12, %c0_13] : memref<1x1x1x1xf32, #tpu.memory_space<vmem>>, vector<1x1x1x1xf32>
    %37 = vector.shape_cast %36 : vector<1x1x1x1xf32> to vector<1x1xf32>
    %38 = vector.shape_cast %35 : vector<1x1xf32> to vector<1x1x1x1xf32>
    tpu.vector_store %arg4[%c0_10, %c0_11, %c0_12, %c0_13], %38 {strides = array<i32>} : memref<1x1x1x1xf32, #tpu.memory_space<vmem>>, vector<1x1x1x1xf32>,
    return
  }
  func.func @transform_0(%arg0: i32, %arg1: i32, %arg2: i32) -> (i32, i32, i32) {
    %c0_i32 = arith.constant 0 : i32
    %c0_i32_0 = arith.constant 0 : i32
    return %arg0, %arg2, %c0_i32 : i32, i32, i32
  }
  func.func @transform_1(%arg0: i32, %arg1: i32, %arg2: i32) -> (i32, i32, i32, i32) {
    %c0_i32 = arith.constant 0 : i32
    %c0_i32_0 = arith.constant 0 : i32
    %c0_i32_1 = arith.constant 0 : i32
    return %arg0, %arg1, %c0_i32, %c0_i32_0 : i32, i32, i32, i32
  }
}

</mosaic_0001>

<bundles_post_ra>
// kernel: tpu_custom_call.1
= control target key start
LH: loop header
LB: loop body
LE: loop exit
PB: predicated region body
PF: predicated region fallthrough
CT: control target
= control target key end

     0   :  { %6 = vsyncpa [#allocation3], 0  ;;  %s1056_s0 = inlined_call_operand.hbm [shape: f32[2,8,256], index: 0, kind: input, shape index: {}]   ;;  %s1057_s1 = inlined_call_operand.vmem [shape: f32[2,1,1,1], index: 1, kind: output, shape index: {}]  }
   0x1   :  { %8 = vsyncpa [#allocation3 + $0x1], 0  ;;  %s880_s6 = smov 0   ;;  %s882_s7 = smov 0  }
   0x2   :  { %s884_s8 = smov 0   ;;  %s886_s9 = smov 0  }
   0x3   :  { %s888_s10 = smov 0   ;;  %s890_s11 = smov 0  }
   0x4 LB: > { %s680_s12 = sadd.s32 4294967295, %s867_s11   ;;  %s33_s13 = sadd.s32 1, %s863_s10  ;;  %s867_s11 = sphi %s890_s11, %s14_s11   ;;  %s863_s10 = sphi %s888_s10, %s1064_s10   ;;  %s859_s9 = sphi %s886_s9, %s1063_s9   ;;  %s855_s8 = sphi %s884_s8, %s1062_s8   ;;  %s851_s7 = sphi %s882_s7, %s1061_s7   ;;  %s847_s6 = sphi %s880_s6, %s1060_s6  }
   0x5   : > { %p35_p0 = scmp.ge.s32.totalorder %s33_s13, 2  ;;  %s42_s14 = sadd.s32 1, %s855_s8 }
   0x6   : > { %p49_p1 = scmp.ne.s32.totalorder %s855_s8, %s851_s7  ;;  %p50_p2 = scmp.eq.s32.totalorder %s867_s11, 0 }
   0x7   : > { %s1066_s13 = smov (%p35_p0, %s33_s13), 0  ;;  %p55_p4 = scmp.ne.s32.totalorder %s851_s7, %s847_s6 }
   0x8   : > { %p916_p3 = por %p50_p2, %p49_p1  ;;  %s37_s16 = ssub.s32 %s863_s10, %s1066_s13 }
   0x9   : > { %p56_p5 = scmp.eq.s32.totalorder %s680_s12, 0  ;;  %p40_p6 = scmp.eq.s32.totalorder %s37_s16, 0 }
   0xa   : > { %p734_p8 = scmp.lt.s32.totalorder %s867_s11, 2  ;;  %s107_s19 = sand.u32 1, %s855_s8  }
   0xb   : > { %p923_p7 = por %p56_p5, %p55_p4  ;;  %s723_s20 = sshll.u32 %s863_s10, 4 }
   0xc   : > { %s929_s18 = scalar_select %p40_p6, %s855_s8, %s42_s14  }
   0xd   : > { %s684_s21 = sshll.u32 %s107_s19, 4  ;;  %s118_s24 = scalar_lea.hbm %s1056_s0, %s723_s20 }
   0xe   : > { %s120_s25 = sshll.u32 %s118_s24, 4  ;;  %s111_s26 = scalar_lea.vmem [#allocation2], %s684_s21  ;;  %s121_s25 = int_to_ptr.hbm [resolvable:$true] %s120_s25 }
   0xf   : > { %s122_s27 = sshll.u32 %s111_s26, 4  ;;  %p731_p9 = pnand %p734_p8, %p916_p3  ;;  %s123_s27 = int_to_ptr.vmem [resolvable:$true] %s122_s27 }
  0x10   : > { %p687_p10 = scmp.ge.s32.totalorder %s867_s11, 1  ;;  %p127_p11 = scmp.lt.s32.totalorder %s867_s11, 3 }
  0x11   : > { %s108_s28 = scalar_lea.sflag [#allocation3], %s107_s19 }
  0x12   : > { %733 = dma.hbm_to_vmem [thread:$0]  (!%p731_p9), %s121_s25, 256, %s123_s27, %s108_s28  }
  0x13   : > { %p128_p12 = pnand %p687_p10, %p127_p11 }
  0x14   : > { %s133_s29 = sand.u32 (!%p128_p12), 1, %s851_s7  }
  0x15   : > { %131 = sbr.rel (%p128_p12) target bundleno = 843 (0x34b), region = 24  ;;  %s688_s30 = sshll.u32 (!%p128_p12), %s133_s29, 4 }
  0x16   : > { %s134_s2 = scalar_lea.sflag (!%p128_p12), [#allocation3], %s133_s29  ;;  %s137_s3 = scalar_lea.vmem (!%p128_p12), [#allocation2], %s688_s30 }
  0x1a   : > { %842 = dma.done.wait (%p923_p7), %s134_s2, 256  }
  0x1b   : > { %844 = vsyncadd (%p923_p7), %s134_s2, 4294967040  ;;  %v165_v0 = vld [vmem:[%s137_s3] sm:$0xff]  ;;  %v166_v1 = vld [vmem:[%s137_s3 + $0x8] sm:$0xff]  ;;  %v184_v7 = vlaneseq  ;;  %v869_v15 = vmov -0.5   ;;  %vm273_vm4 = vcmask 1043456   ;;  %vm224_vm5 = vcmask 64512  }
  0x1c   : > { %v167_v2 = vmul.f32 %v165_v0, %v165_v0  ;;  %v168_v3 = vmul.f32 %v166_v1, %v166_v1  ;;  %p158_p13 = scmp.lt.s32.totalorder %s859_s9, 1  ;;  %vm595_vm6 = vcmask 0  }
  0x1d   : > { %v185_v10 = vshrl.u32 %v184_v7, 7 }
  0x1e   : > { %v169_v4 = vadd.f32 %v168_v3, %v167_v2  ;;  %s1068_s9 = smov (!%p158_p13, %s859_s9), 1 }
  0x1f   : > { %vm188_vm0 = vcmp.lt.s32.totalorder %v185_v10, 4  ;;  %s163_s6 = scalar_lea.vmem %s1057_s1, %s1068_s9 }
  0x20   : > { %170 = vadd.xlane.f32.xlu0 %v169_v4  ;;  %v189_v16 = vsel %vm188_vm0, 0.5, %v869_v15 }
  0x93   : > { %v171_v5 = vpop.xlane.xlu0 %170 }
  0x94   : > { %v172_v6 = vmax.f32 %v171_v5, 1e-24 }
  0x96   : > { %785 = vrsqrt.f32 %v172_v6  ;;  %vm179_vm2 = vweird.f32 %v172_v6 }
  0x9c   : > { %v786_v8 = vpop.eup %785 }
  0x9d   : > { %v174_v9 = vmul.f32 %v786_v8, %v172_v6  ;;  %vm180_vm1 = vweird.f32 %v786_v8 }
  0x9e   : > { %vm181_vm3 = vmor %vm179_vm2, %vm180_vm1 }
  0x9f   : > { %v175_v11 = vmul.f32 %v786_v8, %v174_v9 }
  0xa1   : > { %v176_v12 = vmul.f32 0.5, %v175_v11 }
  0xa3   : > { %v177_v13 = vsub.f32 1.5, %v176_v12 }
  0xa5   : > { %v178_v14 = vmul.f32 %v786_v8, %v177_v13 }
  0xa7   : > { %v182_v17 = vsel %vm181_vm3, %v786_v8, %v178_v14 }
  0xa8   : > { %v193_v18 = vmul.f32 0.5, %v182_v17  ;;  %v190_v19 = vmul.f32 %v189_v16, %v182_v17 }
  0xaa   : > { %v194_v20 = vmul.f32 %v193_v18, %v165_v0  ;;  %v195_v21 = vmul.f32 %v193_v18, %v166_v1  ;;  %v191_v22 = vmul.f32 %v190_v19, %v165_v0  ;;  %v192_v23 = vmul.f32 %v190_v19, %v166_v1 }
  0xac   : > { %v196_v24 = vpack.c.bf16 %v194_v20, %v194_v20  ;;  %v197_v25 = vpack.c.bf16 %v195_v21, %v195_v21  ;;  %v198_v26 = vpack.c.bf16 %v191_v22, %v191_v22  ;;  %v199_v27 = vpack.c.bf16 %v192_v23, %v192_v23 }
  0xae   : > { %200 = vxpose.binary.xlu0.c.b16.start.end [1/2] (short) %v197_v25, %v196_v24, 128  ;;  %v275_v28 = vsel %vm273_vm4, %v198_v26, 0  ;;  %v278_v29 = vsel %vm273_vm4, %v199_v27, 0 }
  0xaf   : > { %287 = vmatpush.bf16.msra.mxu0 %v275_v28  ;;  %724 = vmatpush.bf16.msra.mxu2 %v275_v28 }
  0xb0   : > { %376 = vmatpush.bf16.msra.mxu1 %v278_v29  ;;  %725 = vmatpush.bf16.msra.mxu3 %v278_v29 }
 0x15a   : > { %v208_v30 = vpop.trf.xlu0 }
 0x15b   : > { %689 = vmatmul.msk.bf16.vlgmr.msra.gmra.mxu0 %vm224_vm5, %v208_v30  ;;  %705 = vmatmul.msk.bf16.vlgmr.msra.gmra.mxu1 %vm224_vm5, %v208_v30 }
 0x162   : > { %v209_v31 = vpop.trf.xlu0 }
 0x163   : > { %697 = vmatmul.msk.bf16.vlgmr.msra.gmra.mxu2 %vm224_vm5, %v209_v31  ;;  %713 = vmatmul.msk.bf16.vlgmr.msra.gmra.mxu3 %vm224_vm5, %v209_v31 }
 0x16a   : > { %v210_v32 = vpop.trf.xlu0 }
 0x16b   : > { %690 = vmatmul.msk.bf16.gmra.mxu0 %vm224_vm5, %v210_v32  ;;  %706 = vmatmul.msk.bf16.gmra.mxu1 %vm224_vm5, %v210_v32 }
 0x172   : > { %v211_v33 = vpop.trf.xlu0 }
 0x173   : > { %698 = vmatmul.msk.bf16.gmra.mxu2 %vm224_vm5, %v211_v33  ;;  %714 = vmatmul.msk.bf16.gmra.mxu3 %vm224_vm5, %v211_v33 }
 0x17a   : > { %v212_v34 = vpop.trf.xlu0 }
 0x17b   : > { %691 = vmatmul.msk.bf16.gmra.mxu0 %vm224_vm5, %v212_v34  ;;  %707 = vmatmul.msk.bf16.gmra.mxu1 %vm224_vm5, %v212_v34 }
 0x182   : > { %v213_v35 = vpop.trf.xlu0 }
 0x183   : > { %699 = vmatmul.msk.bf16.gmra.mxu2 %vm224_vm5, %v213_v35  ;;  %715 = vmatmul.msk.bf16.gmra.mxu3 %vm224_vm5, %v213_v35 }
 0x18a   : > { %v214_v36 = vpop.trf.xlu0 }
 0x18b   : > { %692 = vmatmul.msk.bf16.gmra.mxu0 %vm224_vm5, %v214_v36  ;;  %708 = vmatmul.msk.bf16.gmra.mxu1 %vm224_vm5, %v214_v36 }
 0x192   : > { %v215_v37 = vpop.trf.xlu0 }
 0x193   : > { %700 = vmatmul.msk.bf16.gmra.mxu2 %vm224_vm5, %v215_v37  ;;  %716 = vmatmul.msk.bf16.gmra.mxu3 %vm224_vm5, %v215_v37 }
 0x19a   : > { %v216_v38 = vpop.trf.xlu0 }
 0x19b   : > { %693 = vmatmul.msk.bf16.gmra.mxu0 %vm224_vm5, %v216_v38  ;;  %709 = vmatmul.msk.bf16.gmra.mxu1 %vm224_vm5, %v216_v38 }
 0x1a2   : > { %v217_v39 = vpop.trf.xlu0 }
 0x1a3   : > { %701 = vmatmul.msk.bf16.gmra.mxu2 %vm224_vm5, %v217_v39  ;;  %717 = vmatmul.msk.bf16.gmra.mxu3 %vm224_vm5, %v217_v39 }
 0x1aa   : > { %v218_v40 = vpop.trf.xlu0 }
 0x1ab   : > { %694 = vmatmul.msk.bf16.gmra.mxu0 %vm224_vm5, %v218_v40  ;;  %710 = vmatmul.msk.bf16.gmra.mxu1 %vm224_vm5, %v218_v40 }
 0x1b2   : > { %v219_v41 = vpop.trf.xlu0 }
 0x1b3   : > { %702 = vmatmul.msk.bf16.gmra.mxu2 %vm224_vm5, %v219_v41  ;;  %718 = vmatmul.msk.bf16.gmra.mxu3 %vm224_vm5, %v219_v41 }
 0x1ba   : > { %v220_v42 = vpop.trf.xlu0 }
 0x1bb   : > { %695 = vmatmul.msk.bf16.gmra.mxu0 %vm224_vm5, %v220_v42  ;;  %711 = vmatmul.msk.bf16.gmra.mxu1 %vm224_vm5, %v220_v42 }
 0x1c2   : > { %v221_v43 = vpop.trf.xlu0 }
 0x1c3   : > { %703 = vmatmul.msk.bf16.gmra.mxu2 %vm224_vm5, %v221_v43  ;;  %719 = vmatmul.msk.bf16.gmra.mxu3 %vm224_vm5, %v221_v43 }
 0x1ca   : > { %v222_v44 = vpop.trf.xlu0 }
 0x1cb   : > { %696 = vmatmul.msk.bf16.gmra.mxu0 %vm224_vm5, %v222_v44  ;;  %712 = vmatmul.msk.bf16.gmra.mxu1 %vm224_vm5, %v222_v44 }
 0x1d2   : > { %v223_v47 = vpop.trf.xlu0 }
 0x1d3   : > { %704 = vmatmul.msk.bf16.gmra.mxu2 %vm224_vm5, %v223_v47  ;;  %720 = vmatmul.msk.bf16.gmra.mxu3 %vm224_vm5, %v223_v47 }
 0x1d8   : > { %v289_v45 = vpop.f32.mrf.mxu0  ;;  %v378_v46 = vpop.f32.mrf.mxu1 }
 0x1d9   : > { %v458_v56 = vmul.f32 %v289_v45, %v289_v45  ;;  %v459_v57 = vmul.f32 %v378_v46, %v378_v46 }
 0x1db   : > { %v522_v61 = vadd.f32 %v459_v57, %v458_v56 }
 0x1e0   : > { %v291_v48 = vpop.f32.mrf.mxu0  ;;  %v380_v49 = vpop.f32.mrf.mxu1 }
 0x1e1   : > { %v460_v59 = vmul.f32 %v291_v48, %v291_v48  ;;  %v461_v1 = vmul.f32 %v380_v49, %v380_v49 }
 0x1e3   : > { %v523_v62 = vadd.f32 %v522_v61, %v460_v59 }
 0x1e5   : > { %v524_v3 = vadd.f32 %v523_v62, %v461_v1 }
 0x1e6   : > { %v977_v58 = vpop.f32.mrf.mxu2  ;;  %v979_v60 = vpop.f32.mrf.mxu3 }
 0x1e8   : > { %v294_v50 = vpop.f32.mrf.mxu0  ;;  %v383_v51 = vpop.f32.mrf.mxu1 }
 0x1e9   : > { %v462_v2 = vmul.f32 %v294_v50, %v294_v50  ;;  %v463_v7 = vmul.f32 %v383_v51, %v383_v51 }
 0x1eb   : > { %v525_v5 = vadd.f32 %v524_v3, %v462_v2 }
 0x1ed   : > { %v526_v11 = vadd.f32 %v525_v5, %v463_v7 }
 0x1ee   : > { %v981_v4 = vpop.f32.mrf.mxu2  ;;  %v983_v6 = vpop.f32.mrf.mxu3 }
 0x1f0   : > { %v296_v52 = vpop.f32.mrf.mxu0  ;;  %v385_v53 = vpop.f32.mrf.mxu1 }
 0x1f1   : > { %v464_v8 = vmul.f32 %v296_v52, %v296_v52  ;;  %v465_v13 = vmul.f32 %v385_v53, %v385_v53 }
 0x1f3   : > { %v527_v12 = vadd.f32 %v526_v11, %v464_v8 }
 0x1f5   : > { %v528_v16 = vadd.f32 %v527_v12, %v465_v13 }
 0x1f6   : > { %v985_v14 = vpop.f32.mrf.mxu2  ;;  %v987_v17 = vpop.f32.mrf.mxu3 }
 0x1f8   : > { %v299_v54 = vpop.f32.mrf.mxu0  ;;  %v388_v55 = vpop.f32.mrf.mxu1 }
 0x1f9   : > { %v466_v15 = vmul.f32 %v299_v54, %v299_v54  ;;  %v467_v21 = vmul.f32 %v388_v55, %v388_v55 }
 0x1fb   : > { %v529_v20 = vadd.f32 %v528_v16, %v466_v15 }
 0x1fd   : > { %v530_v23 = vadd.f32 %v529_v20, %v467_v21 }
 0x1fe   : > { %v989_v24 = vpop.f32.mrf.mxu2  ;;  %v991_v28 = vpop.f32.mrf.mxu3 }
 0x200   : > { %v301_v63 = vpop.f32.mrf.mxu0  ;;  %v390_v0 = vpop.f32.mrf.mxu1 }
 0x201   : > { %v468_v22 = vmul.f32 %v301_v63, %v301_v63  ;;  %v469_v29 = vmul.f32 %v390_v0, %v390_v0 }
 0x203   : > { %v531_v25 = vadd.f32 %v530_v23, %v468_v22 }
 0x205   : > { %v532_v31 = vadd.f32 %v531_v25, %v469_v29 }
 0x206   : > { %v993_v37 = vpop.f32.mrf.mxu2  ;;  %v995_v39 = vpop.f32.mrf.mxu3 }
 0x208   : > { %v304_v9 = vpop.f32.mrf.mxu0  ;;  %v393_v10 = vpop.f32.mrf.mxu1 }
 0x209   : > { %v470_v30 = vmul.f32 %v304_v9, %v304_v9  ;;  %v471_v33 = vmul.f32 %v393_v10, %v393_v10 }
 0x20b   : > { %v533_v32 = vadd.f32 %v532_v31, %v470_v30 }
 0x20d   : > { %v534_v38 = vadd.f32 %v533_v32, %v471_v33 }
 0x20e   : > { %v997_v47 = vpop.f32.mrf.mxu2  ;;  %v999_v50 = vpop.f32.mrf.mxu3 }
 0x210   : > { %v306_v18 = vpop.f32.mrf.mxu0  ;;  %v395_v19 = vpop.f32.mrf.mxu1 }
 0x211   : > { %v472_v34 = vmul.f32 %v306_v18, %v306_v18  ;;  %v473_v41 = vmul.f32 %v395_v19, %v395_v19 }
 0x213   : > { %v535_v40 = vadd.f32 %v534_v38, %v472_v34 }
 0x215   : > { %v536_v43 = vadd.f32 %v535_v40, %v473_v41  ;;  %v490_v41 = vmul.f32 %v977_v58, %v977_v58  ;;  %v495_v58 = vmul.f32 %v987_v17, %v987_v17  ;;  %v500_v17 = vmul.f32 %v997_v47, %v997_v47 }
 0x216   : > { %v1001_v59 = vpop.f32.mrf.mxu2  ;;  %v1003_v62 = vpop.f32.mrf.mxu3 }
 0x218   : > { %v309_v26 = vpop.f32.mrf.mxu0  ;;  %v398_v27 = vpop.f32.mrf.mxu1 }
 0x219   : > { %v474_v42 = vmul.f32 %v309_v26, %v309_v26  ;;  %v475_v48 = vmul.f32 %v398_v27, %v398_v27 }
 0x21b   : > { %v537_v46 = vadd.f32 %v536_v43, %v474_v42 }
 0x21d   : > { %v538_v51 = vadd.f32 %v537_v46, %v475_v48  ;;  %v492_v46 = vmul.f32 %v981_v4, %v981_v4  ;;  %v497_v4 = vmul.f32 %v991_v28, %v991_v28  ;;  %v502_v28 = vmul.f32 %v1001_v59, %v1001_v59 }
 0x21e   : > { %v346_v9 = vpop.f32.mrf.mxu2  ;;  %v435_v15 = vpop.f32.mrf.mxu3 }
 0x220   : > { %v311_v35 = vpop.f32.mrf.mxu0  ;;  %v400_v36 = vpop.f32.mrf.mxu1 }
 0x221   : > { %v476_v49 = vmul.f32 %v311_v35, %v311_v35  ;;  %v477_v55 = vmul.f32 %v400_v36, %v400_v36 }
 0x223   : > { %v539_v52 = vadd.f32 %v538_v51, %v476_v49  ;;  %v493_v49 = vmul.f32 %v983_v6, %v983_v6  ;;  %v498_v6 = vmul.f32 %v993_v37, %v993_v37  ;;  %v503_v37 = vmul.f32 %v1003_v62, %v1003_v62 }
 0x225   : > { %v540_v57 = vadd.f32 %v539_v52, %v477_v55  ;;  %v494_v52 = vmul.f32 %v985_v14, %v985_v14  ;;  %v499_v14 = vmul.f32 %v995_v39, %v995_v39  ;;  %v504_v39 = vmul.f32 %v346_v9, %v346_v9 }
 0x226   : > { %v349_v26 = vpop.f32.mrf.mxu2  ;;  %v438_v29 = vpop.f32.mrf.mxu3 }
 0x228   : > { %v314_v44 = vpop.f32.mrf.mxu0  ;;  %v403_v45 = vpop.f32.mrf.mxu1 }
 0x229   : > { %v478_v56 = vmul.f32 %v314_v44, %v314_v44  ;;  %v479_v63 = vmul.f32 %v403_v45, %v403_v45  ;;  %v491_v44 = vmul.f32 %v979_v60, %v979_v60  ;;  %v496_v60 = vmul.f32 %v989_v24, %v989_v24 }
 0x22a   : > { %v501_v24 = vmul.f32 %v999_v50, %v999_v50 }
 0x22b   : > { %v541_v61 = vadd.f32 %v540_v57, %v478_v56 }
 0x22d   : > { %v542_v3 = vadd.f32 %v541_v61, %v479_v63 }
 0x22e   : > { %v351_v40 = vpop.f32.mrf.mxu2  ;;  %v440_v43 = vpop.f32.mrf.mxu3 }
 0x22f   : > { %v508_v50 = vmul.f32 %v351_v40, %v351_v40 }
 0x230   : > { %v316_v53 = vpop.f32.mrf.mxu0  ;;  %v405_v54 = vpop.f32.mrf.mxu1 }
 0x231   : > { %v480_v0 = vmul.f32 %v316_v53, %v316_v53  ;;  %v481_v7 = vmul.f32 %v405_v54, %v405_v54 }
 0x233   : > { %v543_v5 = vadd.f32 %v542_v3, %v480_v0 }
 0x235   : > { %v544_v10 = vadd.f32 %v543_v5, %v481_v7 }
 0x236   : > { %v354_v54 = vpop.f32.mrf.mxu2  ;;  %v443_v56 = vpop.f32.mrf.mxu3 }
 0x237   : > { %v511_v62 = vmul.f32 %v443_v56, %v443_v56 }
 0x238   : > { %v319_v1 = vpop.f32.mrf.mxu0  ;;  %v408_v2 = vpop.f32.mrf.mxu1 }
 0x239   : > { %v482_v8 = vmul.f32 %v319_v1, %v319_v1  ;;  %v483_v16 = vmul.f32 %v408_v2, %v408_v2 }
 0x23b   : > { %v545_v13 = vadd.f32 %v544_v10, %v482_v8 }
 0x23d   : > { %v546_v19 = vadd.f32 %v545_v13, %v483_v16  ;;  %v506_v16 = vmul.f32 %v349_v26, %v349_v26 }
 0x23e   : > { %v356_v1 = vpop.f32.mrf.mxu2  ;;  %v445_v3 = vpop.f32.mrf.mxu3 }
 0x23f   : > { %v512_v9 = vmul.f32 %v356_v1, %v356_v1 }
 0x240   : > { %v321_v11 = vpop.f32.mrf.mxu0  ;;  %v410_v12 = vpop.f32.mrf.mxu1 }
 0x241   : > { %v484_v18 = vmul.f32 %v321_v11, %v321_v11  ;;  %v485_v23 = vmul.f32 %v410_v12, %v410_v12  ;;  %v505_v12 = vmul.f32 %v435_v15, %v435_v15 }
 0x243   : > { %v547_v20 = vadd.f32 %v546_v19, %v484_v18  ;;  %v507_v19 = vmul.f32 %v438_v29, %v438_v29 }
 0x245   : > { %v548_v27 = vadd.f32 %v547_v20, %v485_v23 }
 0x246   : > { %v359_v11 = vpop.f32.mrf.mxu2  ;;  %v448_v47 = vpop.f32.mrf.mxu3 }
 0x247   : > { %v515_v29 = vmul.f32 %v448_v47, %v448_v47 }
 0x248   : > { %v324_v21 = vpop.f32.mrf.mxu0  ;;  %v413_v22 = vpop.f32.mrf.mxu1 }
 0x249   : > { %v486_v25 = vmul.f32 %v324_v21, %v324_v21  ;;  %v487_v31 = vmul.f32 %v413_v22, %v413_v22  ;;  %v509_v22 = vmul.f32 %v440_v43, %v440_v43 }
 0x24b   : > { %v549_v30 = vadd.f32 %v548_v27, %v486_v25  ;;  %v510_v25 = vmul.f32 %v354_v54, %v354_v54 }
 0x24d   : > { %v550_v34 = vadd.f32 %v549_v30, %v487_v31 }
 0x24e   : > { %v361_v59 = vpop.f32.mrf.mxu2  ;;  %v450_v30 = vpop.f32.mrf.mxu3 }
 0x24f   : > { %v516_v40 = vmul.f32 %v361_v59, %v361_v59 }
 0x250   : > { %v326_v32 = vpop.f32.mrf.mxu0  ;;  %v415_v33 = vpop.f32.mrf.mxu1 }
 0x251   : > { %v488_v35 = vmul.f32 %v326_v32, %v326_v32  ;;  %v489_v38 = vmul.f32 %v415_v33, %v415_v33  ;;  %v513_v33 = vmul.f32 %v445_v3, %v445_v3 }
 0x253   : > { %v551_v36 = vadd.f32 %v550_v34, %v488_v35  ;;  %v514_v35 = vmul.f32 %v359_v11, %v359_v11 }
 0x255   : > { %v552_v42 = vadd.f32 %v551_v36, %v489_v38 }
 0x256   : > { %v364_v34 = vpop.f32.mrf.mxu2  ;;  %v453_v36 = vpop.f32.mrf.mxu3 }
 0x257   : > { %v553_v45 = vadd.f32 %v552_v42, %v490_v41  ;;  %v517_v42 = vmul.f32 %v450_v30, %v450_v30 }
 0x259   : > { %v554_v48 = vadd.f32 %v553_v45, %v491_v44  ;;  %v518_v44 = vmul.f32 %v364_v34, %v364_v34 }
 0x25b   : > { %v555_v51 = vadd.f32 %v554_v48, %v492_v46 }
 0x25d   : > { %v556_v53 = vadd.f32 %v555_v51, %v493_v49  ;;  %v519_v49 = vmul.f32 %v453_v36, %v453_v36 }
 0x25e   : > { %v366_v46 = vpop.f32.mrf.mxu2  ;;  %v455_v51 = vpop.f32.mrf.mxu3 }
 0x25f   : > { %v557_v55 = vadd.f32 %v556_v53, %v494_v52  ;;  %v520_v53 = vmul.f32 %v366_v46, %v366_v46 }
 0x261   : > { %v558_v57 = vadd.f32 %v557_v55, %v495_v58  ;;  %v521_v58 = vmul.f32 %v455_v51, %v455_v51 }
 0x263   : > { %v559_v61 = vadd.f32 %v558_v57, %v496_v60 }
 0x265   : > { %v560_v63 = vadd.f32 %v559_v61, %v497_v4 }
 0x267   : > { %v561_v0 = vadd.f32 %v560_v63, %v498_v6 }
 0x269   : > { %v562_v2 = vadd.f32 %v561_v0, %v499_v14 }
 0x26b   : > { %v563_v5 = vadd.f32 %v562_v2, %v500_v17 }
 0x26d   : > { %v564_v7 = vadd.f32 %v563_v5, %v501_v24 }
 0x26f   : > { %v565_v8 = vadd.f32 %v564_v7, %v502_v28 }
 0x271   : > { %v566_v10 = vadd.f32 %v565_v8, %v503_v37 }
 0x273   : > { %v567_v13 = vadd.f32 %v566_v10, %v504_v39 }
 0x275   : > { %v568_v18 = vadd.f32 %v567_v13, %v505_v12 }
 0x277   : > { %v569_v20 = vadd.f32 %v568_v18, %v506_v16 }
 0x279   : > { %v570_v21 = vadd.f32 %v569_v20, %v507_v19 }
 0x27b   : > { %v571_v23 = vadd.f32 %v570_v21, %v508_v50 }
 0x27d   : > { %v572_v27 = vadd.f32 %v571_v23, %v509_v22 }
 0x27f   : > { %v573_v31 = vadd.f32 %v572_v27, %v510_v25 }
 0x281   : > { %v574_v32 = vadd.f32 %v573_v31, %v511_v62 }
 0x283   : > { %v575_v15 = vadd.f32 %v574_v32, %v512_v9 }
 0x285   : > { %v576_v26 = vadd.f32 %v575_v15, %v513_v33 }
 0x287   : > { %v577_v38 = vadd.f32 %v576_v26, %v514_v35 }
 0x289   : > { %v578_v41 = vadd.f32 %v577_v38, %v515_v29 }
 0x28b   : > { %v579_v43 = vadd.f32 %v578_v41, %v516_v40 }
 0x28d   : > { %v580_v45 = vadd.f32 %v579_v43, %v517_v42 }
 0x28f   : > { %v581_v48 = vadd.f32 %v580_v45, %v518_v44 }
 0x291   : > { %v582_v52 = vadd.f32 %v581_v48, %v519_v49 }
 0x293   : > { %v583_v54 = vadd.f32 %v582_v52, %v520_v53 }
 0x295   : > { %v584_v55 = vadd.f32 %v583_v54, %v521_v58 }
 0x297   : > { %585 = vadd.xlane.f32.xlu1 %v584_v55 }
 0x30a   : > { %v586_v56 = vpop.xlane.xlu1 %585 }
 0x30b   : > { %v587_v60 = vrot.slane %v586_v56, 4 }
 0x30d   : > { %v588_v57 = vadd.f32 %v587_v60, %v586_v56 }
 0x30f   : > { %v589_v4 = vrot.slane %v588_v57, 2 }
 0x311   : > { %v590_v61 = vadd.f32 %v589_v4, %v588_v57 }
 0x313   : > { %v591_v6 = vrot.slane %v590_v61, 1 }
 0x315   : > { %v592_v63 = vadd.f32 %v591_v6, %v590_v61 }
 0x317   : > { %726 = vpush %v592_v63 }
 0x348   : > { %s727_s12 = spop %726 }
 0x349   : > { %v594_v14 = vstv %s727_s12 }
 0x34a   : > { %596 = vst.msk [vmem:[%s163_s6] sm:$0x1] %vm595_vm6, %v594_v14 }
 0x34b PF: > { %s14_s11 = sadd.s32 1, %s867_s11   ;;  %s1060_s6 = smov %s851_s7 }
 0x34c   : > { %p11_p0 = scmp.ge.s32.totalorder %s14_s11, 4   ;;  %s1061_s7 = smov %s855_s8 }
 0x34d   : > { %s1062_s8 = smov %s929_s18  ;;  %s1063_s9 = smov %s863_s10 }
 0x34e   : > { %s1064_s10 = smov %s1066_s13  ;;  %13 = sbr.rel (!%p11_p0) target bundleno = 4 (0x4), region = 64 }
 0x353   :  { %620 = vsyncpa [#allocation3], 1 }
 0x354   :  { %622 = vsyncpa [#allocation3 + $0x1], 1 }

</bundles_post_ra>
